<compile_context>
chip_gen: v7x
topology: tpu7x:2x2x1
jax: 0.10.0
libtpu: 0.0.40
codegen_flags: <defaults>
</compile_context>

<pallas_src>
import functools

import jax
import jax.numpy as jnp
from jax import lax
from jax.experimental import pallas as pl
from jax.experimental.pallas import tpu as pltpu


_VMEM_LIMIT_BYTES = 64 * 1024 * 1024  # <= physical on v7x; well under v5e/v6e


def _round_up(x, m):
    return (x + m - 1) // m * m


# ---------------------------------------------------------------------------
# Path A: small C_in -> wrapper-side im2col + fused GEMM/bias/ReLU kernel.
# ---------------------------------------------------------------------------

def _gemm_bias_relu_kernel(x_ref, w_ref, b_ref, o_ref):
    # x_ref: (TM, Kc)  bf16 im2col rows (Kc = K*K*C_in padded to 128)
    # w_ref: (Kc, TN)  bf16 BN-scale-folded weights
    # b_ref: (1, TN)   f32 folded BN bias
    # o_ref: (TM, TN)  f32 output tile
    acc = jnp.dot(x_ref[...], w_ref[...], preferred_element_type=jnp.float32)
    o_ref[...] = jnp.maximum(acc + b_ref[...], 0.0).astype(o_ref.dtype)


def _pick_tile_m(m, contract_pad, tile_n, budget_bytes=12 << 20):
    """Largest power-of-two M tile (>=8) whose per-step VMEM fits the budget."""
    m8 = _round_up(m, 8)
    best, tm = 8, 8
    while tm <= 4096:
        per_step = (2 * tm * contract_pad * 2        # bf16 im2col tile x2 buffers
                    + 2 * contract_pad * tile_n * 2  # bf16 weight tile x2 buffers
                    + 2 * tm * tile_n * 4)           # f32 output tile x2 buffers
        if per_step <= budget_bytes:
            best = tm
        tm *= 2
    return min(best, m8)


def _conv_bn_relu_small_cin(x_nchw, w_hwio_folded, bias, *, stride, padding,
                            ksize, c_in, c_out, h_out, w_out):
    n = x_nchw.shape[0]
    contract = ksize * ksize * c_in
    contract_pad = _round_up(contract, 128)
    c_out_pad = _round_up(c_out, 128)
    tile_n = 256 if c_out_pad % 256 == 0 else 128

    # NCHW -> NHWC, spatial zero-pad, bf16 for the MXU.
    x_nhwc = jnp.transpose(x_nchw, (0, 2, 3, 1)).astype(jnp.bfloat16)
    x_p = jnp.pad(x_nhwc, ((0, 0), (padding, padding),
                           (padding, padding), (0, 0)))

    # Wrapper-side im2col: (N, H_out, W_out, K*K*C_in), taps ordered (kh,kw,ci)
    # to match the HWIO weight flattening below.
    patches = []
    for kh in range(ksize):
        for kw in range(ksize):
            lim_h = kh + (h_out - 1) * stride + 1
            lim_w = kw + (w_out - 1) * stride + 1
            patches.append(lax.slice(x_p, (0, kh, kw, 0),
                                     (n, lim_h, lim_w, c_in),
                                     (1, stride, stride, 1)))
    x_col = jnp.concatenate(patches, axis=-1)

    m = n * h_out * w_out
    tile_m = _pick_tile_m(m, contract_pad, tile_n)
    m_pad = _round_up(m, tile_m)

    x2d = jnp.pad(x_col.reshape(m, contract),
                  ((0, m_pad - m), (0, contract_pad - contract)))
    w2d = jnp.pad(w_hwio_folded.reshape(contract, c_out),
                  ((0, contract_pad - contract),
                   (0, c_out_pad - c_out))).astype(jnp.bfloat16)
    bias_p = jnp.pad(bias, (0, c_out_pad - c_out)).reshape(1, c_out_pad)

    cost = pl.CostEstimate(
        flops=2 * m * contract * c_out,
        transcendentals=0,
        bytes_accessed=x2d.size * 2 + w2d.size * 2 + m_pad * c_out_pad * 4)

    out2d = pl.pallas_call(
        _gemm_bias_relu_kernel,
        out_shape=jax.ShapeDtypeStruct((m_pad, c_out_pad), jnp.float32),
        grid_spec=pltpu.PrefetchScalarGridSpec(
            num_scalar_prefetch=0,
            grid=(m_pad // tile_m, c_out_pad // tile_n),
            in_specs=[
                pl.BlockSpec((tile_m, contract_pad), lambda i, j: (i, 0)),
                pl.BlockSpec((contract_pad, tile_n), lambda i, j: (0, j)),
                pl.BlockSpec((1, tile_n), lambda i, j: (0, j)),
            ],
            out_specs=pl.BlockSpec((tile_m, tile_n), lambda i, j: (i, j)),
        ),
        compiler_params=pltpu.CompilerParams(
            dimension_semantics=("parallel", "parallel"),
            vmem_limit_bytes=_VMEM_LIMIT_BYTES),
        cost_estimate=cost,
    )(x2d, w2d, bias_p)

    out = out2d[:m, :c_out].reshape(n, h_out, w_out, c_out)
    return jnp.transpose(out, (0, 3, 1, 2))


# ---------------------------------------------------------------------------
# Path B: C_in >= 128 -> in-kernel per-tap matmuls with an f32 accumulator.
# ---------------------------------------------------------------------------

def _conv_bn_relu_kernel_large_cin(x_ref, w_ref, b_ref, o_ref, *, stride,
                                   ksize, row_tile, w_out, c_in_pad, tile_n):
    # x_ref: (H_in, W_pad, C_in_pad)  bf16 whole padded image (batch squeezed)
    # w_ref: (K*K*C_in_pad, TN)       bf16 BN-folded weights (HWIO flat slice)
    # b_ref: (1, TN)                  f32 folded BN bias slice
    # o_ref: (TH, W_out, TN)          f32 output row tile
    th_in = (row_tile - 1) * stride + ksize
    row0 = pl.program_id(1) * (row_tile * stride)
    row0 = pl.multiple_of(row0, row_tile * stride)
    x_win = x_ref[pl.ds(row0, th_in), :, :]          # (th_in, W_pad, C_in_pad)

    acc = jnp.zeros((row_tile * w_out, tile_n), jnp.float32)
    for kh in range(ksize):
        for kw in range(ksize):
            lim_h = kh + (row_tile - 1) * stride + 1
            lim_w = kw + (w_out - 1) * stride + 1
            patch = lax.slice(x_win, (kh, kw, 0), (lim_h, lim_w, c_in_pad),
                              (stride, stride, 1))   # (TH, W_out, C_in_pad)
            patch = patch.reshape(row_tile * w_out, c_in_pad)
            t = kh * ksize + kw
            acc = acc + jnp.dot(patch,
                                w_ref[pl.ds(t * c_in_pad, c_in_pad), :],
                                preferred_element_type=jnp.float32)

    y = jnp.maximum(acc + b_ref[...], 0.0)
    o_ref[...] = y.reshape(row_tile, w_out, tile_n).astype(o_ref.dtype)


def _pick_row_tile(h_out, w_out, w_pad, c_in_pad, tile_n, ksize, stride,
                   budget_bytes=40 << 20):
    """Largest row tile whose full per-step VMEM working set fits the budget."""
    best = 1
    for th in range(1, h_out + 1):
        n_tiles = -(-h_out // th)
        h_in = (n_tiles * th - 1) * stride + ksize
        per_step = (
            2 * h_in * w_pad * c_in_pad * 2              # bf16 image x2 buffers
            + 2 * ksize * ksize * c_in_pad * tile_n * 2  # bf16 weights x2 buffers
            + 2 * th * w_out * tile_n * 4                # f32 out tile x2 buffers
            + th * w_out * tile_n * 4                    # f32 accumulator
            + 2 * th * w_out * c_in_pad * 2)             # bf16 per-tap patch temps
        if per_step <= budget_bytes:
            best = th
    return best


def _conv_bn_relu_large_cin(x_nchw, w_hwio_folded, bias, *, stride, padding,
                            ksize, c_in, c_out, h_out, w_out):
    n, _, h, w = x_nchw.shape
    c_in_pad = _round_up(c_in, 128)
    c_out_pad = _round_up(c_out, 128)
    tile_n = 256 if c_out_pad % 256 == 0 else 128

    h_pad, w_pad = h + 2 * padding, w + 2 * padding

    row_tile = _pick_row_tile(h_out, w_out, w_pad, c_in_pad, tile_n, ksize,
                              stride)
    n_row_tiles = -(-h_out // row_tile)
    h_out_pad = n_row_tiles * row_tile
    # Input rows the (possibly ragged) last row tile may touch.
    h_in_total = max(h_pad, (h_out_pad - 1) * stride + ksize)

    # NCHW -> NHWC; spatial zero-pad (+ bottom rows for the ragged last tile),
    # pad C_in to a lane multiple, cast to bf16.
    x_nhwc = jnp.transpose(x_nchw, (0, 2, 3, 1)).astype(jnp.bfloat16)
    x_p = jnp.pad(x_nhwc, ((0, 0),
                           (padding, h_in_total - h - padding),
                           (padding, padding),
                           (0, c_in_pad - c_in)))

    w_p = jnp.pad(w_hwio_folded, ((0, 0), (0, 0),
                                  (0, c_in_pad - c_in),
                                  (0, c_out_pad - c_out))).astype(jnp.bfloat16)
    w2d = w_p.reshape(ksize * ksize * c_in_pad, c_out_pad)
    bias_p = jnp.pad(bias, (0, c_out_pad - c_out)).reshape(1, c_out_pad)

    kernel = functools.partial(
        _conv_bn_relu_kernel_large_cin, stride=stride, ksize=ksize,
        row_tile=row_tile, w_out=w_out, c_in_pad=c_in_pad, tile_n=tile_n)

    cost = pl.CostEstimate(
        flops=2 * n * h_out * w_out * ksize * ksize * c_in * c_out,
        transcendentals=0,
        bytes_accessed=(x_p.size * 2 + w2d.size * 2
                        + n * h_out_pad * w_out * c_out_pad * 4))

    out_nhwc = pl.pallas_call(
        kernel,
        out_shape=jax.ShapeDtypeStruct((n, h_out_pad, w_out, c_out_pad),
                                       jnp.float32),
        grid_spec=pltpu.PrefetchScalarGridSpec(
            num_scalar_prefetch=0,
            grid=(n, n_row_tiles, c_out_pad // tile_n),
            in_specs=[
                # Whole padded image per batch element (batch dim squeezed);
                # same block across row/C_out axes => DMA'd once per image.
                # TODO(synk): halo'd row-tiled input DMA for very large images.
                pl.BlockSpec((None, h_in_total, w_pad, c_in_pad),
                             lambda b, r, j: (b, 0, 0, 0)),
                pl.BlockSpec((ksize * ksize * c_in_pad, tile_n),
                             lambda b, r, j: (0, j)),
                pl.BlockSpec((1, tile_n), lambda b, r, j: (0, j)),
            ],
            out_specs=pl.BlockSpec((None, row_tile, w_out, tile_n),
                                   lambda b, r, j: (b, r, 0, j)),
        ),
        compiler_params=pltpu.CompilerParams(
            dimension_semantics=("parallel", "parallel", "parallel"),
            vmem_limit_bytes=_VMEM_LIMIT_BYTES),
        cost_estimate=cost,
    )(x_p, w2d, bias_p)

    out = out_nhwc[:, :h_out, :, :c_out]
    return jnp.transpose(out, (0, 3, 1, 2))


# ---------------------------------------------------------------------------
# Public entry point (PyTorch NCHW / OIHW conventions).
# ---------------------------------------------------------------------------

@functools.partial(jax.jit, static_argnames=("stride", "padding", "eps"))
def conv_bn_relu(x_nchw, weight_oihw, gamma, beta, running_mean, running_var,
                 *, stride, padding, eps=1e-5):
    n, c_in, h, w = x_nchw.shape
    c_out, c_in_w, kh_, kw_ = weight_oihw.shape
    assert c_in == c_in_w and kh_ == kw_
    ksize = kh_

    h_out = (h + 2 * padding - ksize) // stride + 1
    w_out = (w + 2 * padding - ksize) // stride + 1

    # Fold inference-mode BN (running stats) into the conv weights + a bias.
    scale = (gamma / jnp.sqrt(running_var + eps)).astype(jnp.float32)
    bias = beta.astype(jnp.float32) - running_mean.astype(jnp.float32) * scale
    w_hwio = jnp.transpose(weight_oihw, (2, 3, 1, 0)).astype(jnp.float32)
    w_folded = w_hwio * scale[None, None, None, :]

    common = dict(stride=stride, padding=padding, ksize=ksize,
                  c_in=c_in, c_out=c_out, h_out=h_out, w_out=w_out)
    if c_in < 128:
        return _conv_bn_relu_small_cin(x_nchw, w_folded, bias, **common)
    return _conv_bn_relu_large_cin(x_nchw, w_folded, bias, **common)


def _reference(x, w, gamma, beta, mean, var, stride, padding, eps=1e-5):
    y = lax.conv_general_dilated(
        x, w, (stride, stride),
        ((padding, padding), (padding, padding)),
        dimension_numbers=("NCHW", "OIHW", "NCHW"))
    s = (gamma / jnp.sqrt(var + eps)).reshape(1, -1, 1, 1)
    b = (beta - mean * gamma / jnp.sqrt(var + eps)).reshape(1, -1, 1, 1)
    return jnp.maximum(y * s + b, 0.0)


if __name__ == "__main__":
    # ConvBNReLU(C_in=4, C_out=8, kernel_size=3, stride=1, padding=1)
    key = jax.random.PRNGKey(0)

    def make_case(case_key, n, c_in, c_out, k, h, w):
        kx, kw_, kg, kb, km, kv = jax.random.split(case_key, 6)
        x = jax.random.normal(kx, (n, c_in, h, w), jnp.float32)
        weight = jax.random.normal(kw_, (c_out, c_in, k, k), jnp.float32) * 0.1
        gamma = 1.0 + 0.1 * jax.random.normal(kg, (c_out,), jnp.float32)
        beta = 0.1 * jax.random.normal(kb, (c_out,), jnp.float32)
        mean = 0.1 * jax.random.normal(km, (c_out,), jnp.float32)
        var = jax.random.uniform(kv, (c_out,), jnp.float32,
                                 minval=0.5, maxval=1.5)
        return x, weight, gamma, beta, mean, var

    cases = [
        # (N, C_in, C_out, K, stride, padding, H, W)
        (2, 4, 8, 3, 1, 1, 16, 16),   # small-C_in path (wrapper im2col GEMM)
        (2, 4, 8, 3, 2, 1, 16, 16),   # strided conv, small-C_in path
        (1, 128, 8, 3, 1, 1, 8, 8),   # large-C_in path (per-tap MXU accumulation)
    ]

    keys = jax.random.split(key, len(cases))
    for case_key, (n, c_in, c_out, k, s, p, h, w) in zip(keys, cases):
        x, weight, gamma, beta, mean, var = make_case(
            case_key, n, c_in, c_out, k, h, w)
        out = conv_bn_relu(x, weight, gamma, beta, mean, var,
                           stride=s, padding=p)
        out = jax.block_until_ready(out)
        ref = _reference(x, weight, gamma, beta, mean, var, s, p)
        assert out.shape == ref.shape, (out.shape, ref.shape)
        err = float(jnp.max(jnp.abs(out - ref)))
        # bf16 matmul operands with f32 accumulation -> loosened tolerance.
        assert jnp.allclose(out, ref, atol=5e-2, rtol=5e-2), err

    print("KERNEL_OK")
</pallas_src>

<mosaic_0001>
module attributes {stable_mosaic.version = 11 : i64} {
  func.func @_gemm_bias_relu_kernel(%arg0: i32, %arg1: i32, %arg2: memref<512x128xbf16, #tpu.memory_space<vmem>>, %arg3: memref<128x128xbf16, #tpu.memory_space<vmem>>, %arg4: memref<1x128xf32, #tpu.memory_space<vmem>>, %arg5: memref<512x128xf32, #tpu.memory_space<vmem>>) attributes {dimension_semantics = [#tpu.dimension_semantics<parallel>, #tpu.dimension_semantics<parallel>], iteration_bounds = array<i64: 1, 1>, scalar_prefetch = 0 : i64, scratch_operands = 0 : i64, tpu.core_type = #tpu.core_type<tc>, window_params = [{transform_indices = @transform_0, window_bounds = array<i64: 512, 128>}, {transform_indices = @transform_1, window_bounds = array<i64: 128, 128>}, {transform_indices = @transform_2, window_bounds = array<i64: 1, 128>}, {transform_indices = @transform_3, window_bounds = array<i64: 512, 128>}]} {
    %c0 = arith.constant 0 : index
    %c0_0 = arith.constant 0 : index
    %0 = vector.load %arg2[%c0, %c0_0] : memref<512x128xbf16, #tpu.memory_space<vmem>>, vector<512x128xbf16>
    %c0_1 = arith.constant 0 : index
    %c0_2 = arith.constant 0 : index
    %1 = vector.load %arg3[%c0_1, %c0_2] : memref<128x128xbf16, #tpu.memory_space<vmem>>, vector<128x128xbf16>
    %cst = arith.constant dense<0.000000e+00> : vector<512x128xf32>
    %2 = tpu.matmul %0, %1, %cst {dimension_numbers = #tpu.dot_dimension_numbers<[1], [0], [0], [1], [0, 0, 1, 1], [], []>} : vector<512x128xbf16>, vector<128x128xbf16>, vector<512x128xf32> -> vector<512x128xf32>
    %c0_3 = arith.constant 0 : index
    %c0_4 = arith.constant 0 : index
    %3 = vector.load %arg4[%c0_3, %c0_4] : memref<1x128xf32, #tpu.memory_space<vmem>>, vector<1x128xf32>
    %4 = vector.broadcast %3 : vector<1x128xf32> to vector<512x128xf32>
    %5 = arith.addf %2, %4 : vector<512x128xf32>
    %cst_5 = arith.constant 0.000000e+00 : f32
    %6 = vector.broadcast %cst_5 : f32 to vector<512x128xf32>
    %7 = arith.maximumf %5, %6 : vector<512x128xf32>
    %c0_6 = arith.constant 0 : index
    %c0_7 = arith.constant 0 : index
    %8 = vector.load %arg5[%c0_6, %c0_7] : memref<512x128xf32, #tpu.memory_space<vmem>>, vector<512x128xf32>
    tpu.vector_store %arg5[%c0_6, %c0_7], %7 {strides = array<i32>} : memref<512x128xf32, #tpu.memory_space<vmem>>, vector<512x128xf32>,
    return
  }
  func.func @transform_0(%arg0: i32, %arg1: i32) -> (i32, i32) {
    %c0_i32 = arith.constant 0 : i32
    %c0_i32_0 = arith.constant 0 : i32
    return %arg0, %c0_i32 : i32, i32
  }
  func.func @transform_1(%arg0: i32, %arg1: i32) -> (i32, i32) {
    %c0_i32 = arith.constant 0 : i32
    %c0_i32_0 = arith.constant 0 : i32
    return %c0_i32, %arg1 : i32, i32
  }
  func.func @transform_2(%arg0: i32, %arg1: i32) -> (i32, i32) {
    %c0_i32 = arith.constant 0 : i32
    %c0_i32_0 = arith.constant 0 : i32
    return %c0_i32, %arg1 : i32, i32
  }
  func.func @transform_3(%arg0: i32, %arg1: i32) -> (i32, i32) {
    %c0_i32 = arith.constant 0 : i32
    return %arg0, %arg1 : i32, i32
  }
}

</mosaic_0001>

<bundles_post_ra>
// kernel: conv_bn_relu.1
= control target key start
LH: loop header
LB: loop body
LE: loop exit
PB: predicated region body
PF: predicated region fallthrough
CT: control target
= control target key end

     0   :  { %8 = vsyncpa [#allocation3], 0  ;;  %s1285_s0 = inlined_call_operand.hbm [shape: bf16[512,128], index: 0, kind: input, shape index: {}]   ;;  %s1286_s1 = inlined_call_operand.hbm [shape: bf16[128,128], index: 1, kind: input, shape index: {}]   ;;  %s1287_s2 = inlined_call_operand.hbm [shape: f32[1,128], index: 2, kind: input, shape index: {}]   ;;  %s1288_s3 = inlined_call_operand.hbm [shape: f32[512,128], index: 3, kind: output, shape index: {}]  }
   0x1   :  { %9 = vsyncpa [#allocation6], 0 }
   0x2   :  { %10 = vsyncpa [#allocation4], 0  ;;  %s1136_s12 = smov [#allocation5]   ;;  %s1137_s14 = smov [#allocation2]  }
   0x3   :  { %s28_s13 = sshll.u32 %s1136_s12, 4  ;;  %s16_s15 = sshll.u32 %s1137_s14, 4  ;;  %s29_s13 = int_to_ptr.vmem [resolvable:$true] %s28_s13  ;;  %s1164_s15 = int_to_ptr.vmem [resolvable:$true] %s16_s15 }
   0x4   :  { %s1042_s18 = scalar_lea.hbm %s1286_s1, 1024 }
   0x5   :  { %p1043_p0 = scmp.ne.s32.totalorder %s1286_s1, %s1042_s18  ;;  %p1046_p1 = scmp.lt.u32.totalorder %s1042_s18, %s1286_s1 }
   0x7   :  { %p1048_p2 = pnand %p1046_p1, %p1043_p0 }
   0x9   :  { %1051 = shalt.err (!%p1048_p2)
}
   0xa   :  { %s1052_s23 = scalar_lea.vmem %s29_s13, 1024  ;;  %p1057_p4 = scmp.lt.s32.totalorder %s29_s13, %s29_s13 }
   0xb   :  { %p1053_p3 = scmp.ne.s32.totalorder %s29_s13, %s1052_s23  ;;  %p1058_p5 = scmp.lt.s32.totalorder %s1052_s23, %s1052_s23 }
   0xd   :  { %p1059_p6 = por %p1058_p5, %p1057_p4 }
   0xf   :  { %p1060_p7 = pnand %p1059_p6, %p1053_p3 }
  0x11   :  { %1063 = shalt.err (!%p1060_p7)
}
  0x12   :  { %s1138_s24 = smov 64   ;;  %s1139_s25 = smov 4  }
  0x13   :  { %34 = dma.hbm_to_vmem [thread:$0]  %s1286_s1, 1024, %s29_s13, [#allocation6], %s1138_s24, %s1138_s24, %s1139_s25  }
  0x14   :  { %s1064_s30 = scalar_lea.hbm %s1285_s0, 4096 }
  0x15   :  { %p1065_p8 = scmp.ne.s32.totalorder %s1285_s0, %s1064_s30  ;;  %p1068_p9 = scmp.lt.u32.totalorder %s1064_s30, %s1285_s0 }
  0x17   :  { %p1070_p10 = pnand %p1068_p9, %p1065_p8 }
  0x19   :  { %1073 = shalt.err (!%p1070_p10)
}
  0x1a   :  { %s1074_s8 = scalar_lea.vmem %s1164_s15, 4096  ;;  %p1079_p12 = scmp.lt.s32.totalorder %s1164_s15, %s1164_s15 }
  0x1b   :  { %p1075_p11 = scmp.ne.s32.totalorder %s1164_s15, %s1074_s8  ;;  %p1080_p13 = scmp.lt.s32.totalorder %s1074_s8, %s1074_s8 }
  0x1d   :  { %p1081_p0 = por %p1080_p13, %p1079_p12 }
  0x1f   :  { %p1082_p1 = pnand %p1081_p0, %p1075_p11 }
  0x21   :  { %1085 = shalt.err (!%p1082_p1)
}
  0x22   :  { %22 = dma.hbm_to_vmem [thread:$0]  %s1285_s0, 4096, %s1164_s15, [#allocation3], %s1138_s24, %s1138_s24, %s1139_s25  }
  0x23   :  { %s1140_s10 = smov [#allocation7]   ;;  %s1086_s14 = scalar_lea.hbm %s1287_s2, 16 }
  0x24   :  { %s41_s11 = sshll.u32 %s1140_s10, 4  ;;  %p1087_p2 = scmp.ne.s32.totalorder %s1287_s2, %s1086_s14  ;;  %s42_s11 = int_to_ptr.vmem [resolvable:$true] %s41_s11 }
  0x25   :  { %p1090_p3 = scmp.lt.u32.totalorder %s1086_s14, %s1287_s2 }
  0x27   :  { %p1092_p4 = pnand %p1090_p3, %p1087_p2 }
  0x29   :  { %1095 = shalt.err (!%p1092_p4)
}
  0x2a   :  { %s1096_s20 = scalar_lea.vmem %s42_s11, 16  ;;  %s1100_s0 = scalar_lea.vmem %s42_s11, 32 }
  0x2b   :  { %p1097_p5 = scmp.ne.s32.totalorder %s42_s11, %s1096_s20  ;;  %p1101_p6 = scmp.lt.s32.totalorder %s42_s11, %s42_s11 }
  0x2c   :  { %p1102_p7 = scmp.lt.s32.totalorder %s1100_s0, %s1096_s20 }
  0x2e   :  { %p1103_p8 = por %p1102_p7, %p1101_p6 }
  0x30   :  { %p1104_p9 = pnand %p1103_p8, %p1097_p5 }
  0x32   :  { %1107 = shalt.err (!%p1104_p9)
}
  0x33   :  { %44 = dma.hbm_to_vmem [thread:$0]  %s1287_s2, 16, %s42_s11, [#allocation6]  }
  0x34   :  { %1130 = dma.done.wait [#allocation3], 4096  }
  0x35   :  { %1131 = vsyncadd [#allocation3], 4294963200 }
  0x36   :  { %1132 = dma.done.wait [#allocation6], 1040  }
  0x37   :  { %1133 = vsyncadd [#allocation6], 4294966256  ;;  %v1002_v0 = vld [vmem:[#allocation5] sm:$0xff]   ;;  %v1003_v1 = vld [vmem:[#allocation5 + $0x8] sm:$0xff]   ;;  %s1141_s2 = smov [#allocation8]  }
  0x38   :  { %898 = vmatprep.subr.bf16.mxu0 %v1002_v0  ;;  %978 = vmatprep.subr.bf16.mxu1 %v1002_v0  ;;  %v1004_v2 = vld [vmem:[#allocation5 + $0x10] sm:$0xff]   ;;  %v1005_v3 = vld [vmem:[#allocation5 + $0x18] sm:$0xff]   ;;  %v1010_v4 = vld [vmem:[#allocation2] sm:$0xff]   ;;  %s804_s22 = sshll.u32 %s1141_s2, 4  ;;  %s805_s22 = int_to_ptr.vmem [resolvable:$true] %s804_s22 }
  0x39   :  { %899 = vmatpush3.bf16.msra.mxu0 %v1002_v0  ;;  %986 = vmatpush3.bf16.msra.mxu1 %v1002_v0  ;;  %v1011_v5 = vld [vmem:[#allocation2 + $0x80] sm:$0xff]   ;;  %v1007_v7 = vld [vmem:[#allocation5 + $0x28] sm:$0xff]   ;;  %v1008_v8 = vld [vmem:[#allocation5 + $0x30] sm:$0xff]   ;;  %s1108_s23 = scalar_lea.vmem %s805_s22, 8192  ;;  %p1113_p11 = scmp.lt.s32.totalorder %s805_s22, %s805_s22 }
  0x3a   :  { %900 = vmatprep.subr.bf16.mxu0 %v1003_v1  ;;  %979 = vmatprep.subr.bf16.mxu1 %v1003_v1  ;;  %v1006_v6 = vld [vmem:[#allocation5 + $0x20] sm:$0xff]   ;;  %v1009_v9 = vld [vmem:[#allocation5 + $0x38] sm:$0xff]   ;;  %v1012_v10 = vld [vmem:[#allocation2 + $0x8] sm:$0xff]   ;;  %p1109_p10 = scmp.ne.s32.totalorder %s805_s22, %s1108_s23  ;;  %p1114_p12 = scmp.lt.s32.totalorder %s1108_s23, %s1108_s23 }
  0x3b   :  { %914 = vmatprep.mubr.bf16.mxu0 %v1010_v4  ;;  %946 = vmatprep.mubr.bf16.mxu1 %v1011_v5  ;;  %v1013_v11 = vld [vmem:[#allocation2 + $0x88] sm:$0xff]   ;;  %v1014_v12 = vld [vmem:[#allocation2 + $0x10] sm:$0xff]   ;;  %v1016_v14 = vld [vmem:[#allocation2 + $0x18] sm:$0xff]  }
  0x3c   :  { %v1015_v13 = vld [vmem:[#allocation2 + $0x90] sm:$0xff]   ;;  %v1017_v15 = vld [vmem:[#allocation2 + $0x98] sm:$0xff]   ;;  %v1018_v16 = vld [vmem:[#allocation2 + $0x20] sm:$0xff]   ;;  %p1115_p13 = por %p1114_p12, %p1113_p11 }
  0x3d   :  { %901 = vmatpush3.bf16.msra.mxu0 %v1003_v1  ;;  %987 = vmatpush3.bf16.msra.mxu1 %v1003_v1  ;;  %v1019_v17 = vld [vmem:[#allocation2 + $0xa0] sm:$0xff]   ;;  %v1020_v18 = vld [vmem:[#allocation2 + $0x28] sm:$0xff]   ;;  %v1022_v20 = vld [vmem:[#allocation2 + $0x30] sm:$0xff]  }
  0x3e   :  { %902 = vmatprep.subr.bf16.mxu0 %v1004_v2  ;;  %980 = vmatprep.subr.bf16.mxu1 %v1004_v2  ;;  %v1021_v19 = vld [vmem:[#allocation2 + $0xa8] sm:$0xff]   ;;  %v1023_v21 = vld [vmem:[#allocation2 + $0xb0] sm:$0xff]   ;;  %v1024_v22 = vld [vmem:[#allocation2 + $0x38] sm:$0xff]   ;;  %p1116_p0 = pnand %p1115_p13, %p1109_p10 }
  0x3f   :  { %v1025_v23 = vld [vmem:[#allocation2 + $0xb8] sm:$0xff]   ;;  %v1026_v24 = vld [vmem:[#allocation2 + $0x40] sm:$0xff]   ;;  %v1028_v26 = vld [vmem:[#allocation2 + $0x48] sm:$0xff]  }
  0x40   :  { %v1027_v25 = vld [vmem:[#allocation2 + $0xc0] sm:$0xff]   ;;  %v1029_v27 = vld [vmem:[#allocation2 + $0xc8] sm:$0xff]   ;;  %v1030_v28 = vld [vmem:[#allocation2 + $0x50] sm:$0xff]  }
  0x41   :  { %903 = vmatpush3.bf16.msra.mxu0 %v1004_v2  ;;  %988 = vmatpush3.bf16.msra.mxu1 %v1004_v2  ;;  %v1031_v29 = vld [vmem:[#allocation2 + $0xd0] sm:$0xff]   ;;  %v1032_v30 = vld [vmem:[#allocation2 + $0x58] sm:$0xff]   ;;  %v1034_v32 = vld [vmem:[#allocation2 + $0x60] sm:$0xff]  }
  0x42   :  { %904 = vmatprep.subr.bf16.mxu0 %v1005_v3  ;;  %981 = vmatprep.subr.bf16.mxu1 %v1005_v3  ;;  %v1033_v31 = vld [vmem:[#allocation2 + $0xd8] sm:$0xff]   ;;  %v1035_v33 = vld [vmem:[#allocation2 + $0xe0] sm:$0xff]   ;;  %v1036_v34 = vld [vmem:[#allocation2 + $0x68] sm:$0xff]  }
  0x43   :  { %v1037_v35 = vld [vmem:[#allocation2 + $0xe8] sm:$0xff]   ;;  %v1038_v36 = vld [vmem:[#allocation2 + $0x70] sm:$0xff]   ;;  %v1040_v38 = vld [vmem:[#allocation2 + $0x78] sm:$0xff]  }
  0x44   :  { %v1039_v37 = vld [vmem:[#allocation2 + $0xf0] sm:$0xff]   ;;  %v1041_v39 = vld [vmem:[#allocation2 + $0xf8] sm:$0xff]   ;;  %v1207_v40 = vld [vmem:[#allocation7] ss:$0 sm:$0xff] }
  0x45   :  { %905 = vmatpush3.bf16.msra.mxu0 %v1005_v3  ;;  %989 = vmatpush3.bf16.msra.mxu1 %v1005_v3 }
  0x46   :  { %906 = vmatprep.subr.bf16.mxu0 %v1006_v6  ;;  %982 = vmatprep.subr.bf16.mxu1 %v1006_v6 }
  0x49   :  { %907 = vmatpush3.bf16.msra.mxu0 %v1006_v6  ;;  %990 = vmatpush3.bf16.msra.mxu1 %v1006_v6 }
  0x4a   :  { %908 = vmatprep.subr.bf16.mxu0 %v1007_v7  ;;  %983 = vmatprep.subr.bf16.mxu1 %v1007_v7 }
  0x4d   :  { %909 = vmatpush3.bf16.msra.mxu0 %v1007_v7  ;;  %991 = vmatpush3.bf16.msra.mxu1 %v1007_v7 }
  0x4e   :  { %910 = vmatprep.subr.bf16.mxu0 %v1008_v8  ;;  %984 = vmatprep.subr.bf16.mxu1 %v1008_v8 }
  0x51   :  { %911 = vmatpush3.bf16.msra.mxu0 %v1008_v8  ;;  %992 = vmatpush3.bf16.msra.mxu1 %v1008_v8 }
  0x52   :  { %912 = vmatprep.subr.bf16.mxu0 %v1009_v9  ;;  %985 = vmatprep.subr.bf16.mxu1 %v1009_v9 }
  0x55   :  { %913 = vmatpush3.bf16.msra.mxu0 %v1009_v9  ;;  %993 = vmatpush3.bf16.msra.mxu1 %v1009_v9 }
  0x58   :  { %915 = vmatmul.mubr.bf16.vlgmr.msra.gmra.mrb[0].mxu0 %v1012_v10  ;;  %947 = vmatmul.mubr.bf16.vlgmr.msra.gmra.mrb[0].mxu1 %v1013_v11 }
  0x59   :  { %918 = vmatprep.mubr.bf16.mxu0 %v1014_v12  ;;  %950 = vmatprep.mubr.bf16.mxu1 %v1015_v13 }
  0x60   :  { %919 = vmatmul.mubr.bf16.gmra.mrb[4].mxu0 %v1016_v14  ;;  %951 = vmatmul.mubr.bf16.gmra.mrb[4].mxu1 %v1017_v15 }
  0x61   :  { %922 = vmatprep.mubr.bf16.mxu0 %v1018_v16  ;;  %954 = vmatprep.mubr.bf16.mxu1 %v1019_v17 }
  0x68   :  { %923 = vmatmul.mubr.bf16.gmra.mrb[8].mxu0 %v1020_v18  ;;  %955 = vmatmul.mubr.bf16.gmra.mrb[8].mxu1 %v1021_v19 }
  0x69   :  { %926 = vmatprep.mubr.bf16.mxu0 %v1022_v20  ;;  %958 = vmatprep.mubr.bf16.mxu1 %v1023_v21 }
  0x70   :  { %927 = vmatmul.mubr.bf16.gmra.mrb[12].mxu0 %v1024_v22  ;;  %959 = vmatmul.mubr.bf16.gmra.mrb[12].mxu1 %v1025_v23 }
  0x71   :  { %930 = vmatprep.mubr.bf16.mxu0 %v1026_v24  ;;  %962 = vmatprep.mubr.bf16.mxu1 %v1027_v25 }
  0x78   :  { %931 = vmatmul.mubr.bf16.gmra.mrb[16].mxu0 %v1028_v26  ;;  %963 = vmatmul.mubr.bf16.gmra.mrb[16].mxu1 %v1029_v27 }
  0x79   :  { %934 = vmatprep.mubr.bf16.mxu0 %v1030_v28  ;;  %966 = vmatprep.mubr.bf16.mxu1 %v1031_v29 }
  0x80   :  { %935 = vmatmul.mubr.bf16.gmra.mrb[20].mxu0 %v1032_v30  ;;  %967 = vmatmul.mubr.bf16.gmra.mrb[20].mxu1 %v1033_v31 }
  0x81   :  { %938 = vmatprep.mubr.bf16.mxu0 %v1034_v32  ;;  %970 = vmatprep.mubr.bf16.mxu1 %v1035_v33 }
  0x88   :  { %939 = vmatmul.mubr.bf16.gmra.mrb[24].mxu0 %v1036_v34  ;;  %971 = vmatmul.mubr.bf16.gmra.mrb[24].mxu1 %v1037_v35 }
  0x89   :  { %942 = vmatprep.mubr.bf16.mxu0 %v1038_v36  ;;  %974 = vmatprep.mubr.bf16.mxu1 %v1039_v37 }
  0x90   :  { %943 = vmatmul.mubr.bf16.gmra.mrb[28].mxu0 %v1040_v38  ;;  %975 = vmatmul.mubr.bf16.gmra.mrb[28].mxu1 %v1041_v39 }
 0x12b   :  { %v916_v41 = vpop.f32.mrb[0].mxu0  ;;  %v948_v42 = vpop.f32.mrb[0].mxu1 }
 0x12c   :  { %v425_v43 = vadd.f32 %v916_v41, %v1207_v40  ;;  %v553_v44 = vadd.f32 %v948_v42, %v1207_v40  ;;  %v416_v45 = vpop.f32.mrb[1].mxu0  ;;  %v544_v46 = vpop.f32.mrb[1].mxu1 }
 0x12d   :  { %v417_v47 = vadd.f32 %v1207_v40, %v416_v45  ;;  %v545_v48 = vadd.f32 %v1207_v40, %v544_v46  ;;  %v917_v49 = vpop.f32.mrb[2].mxu0  ;;  %v949_v50 = vpop.f32.mrb[2].mxu1 }
 0x12e   :  { %v673_v51 = vmax.f32 %v425_v43, 0.0  ;;  %v705_v52 = vmax.f32 %v553_v44, 0.0  ;;  %v428_v53 = vadd.f32 %v917_v49, %v1207_v40  ;;  %v556_v54 = vadd.f32 %v949_v50, %v1207_v40  ;;  %v419_v55 = vpop.f32.mrb[3].mxu0  ;;  %v547_v56 = vpop.f32.mrb[3].mxu1 }
 0x12f   :  { %v671_v57 = vmax.f32 %v417_v47, 0.0  ;;  %v703_v58 = vmax.f32 %v545_v48, 0.0  ;;  %v420_v59 = vadd.f32 %v1207_v40, %v419_v55  ;;  %v548_v60 = vadd.f32 %v1207_v40, %v547_v56 }
 0x130   :  { %737 = vst [vmem:[#allocation8 + $0x10] sm:$0xff] %v673_v51  ;;  %769 = vst [vmem:[#allocation8 + $0x110] sm:$0xff] %v705_v52  ;;  %v674_v61 = vmax.f32 %v428_v53, 0.0  ;;  %v706_v62 = vmax.f32 %v556_v54, 0.0 }
 0x131   :  { %735 = vst [vmem:[#allocation8] sm:$0xff] %v671_v57  ;;  %767 = vst [vmem:[#allocation8 + $0x100] sm:$0xff] %v703_v58  ;;  %v672_v63 = vmax.f32 %v420_v59, 0.0  ;;  %v704_v0 = vmax.f32 %v548_v60, 0.0 }
 0x132   :  { %738 = vst [vmem:[#allocation8 + $0x18] sm:$0xff] %v674_v61  ;;  %770 = vst [vmem:[#allocation8 + $0x118] sm:$0xff] %v706_v62 }
 0x133   :  { %736 = vst [vmem:[#allocation8 + $0x8] sm:$0xff] %v672_v63  ;;  %768 = vst [vmem:[#allocation8 + $0x108] sm:$0xff] %v704_v0  ;;  %v920_v1 = vpop.f32.mrb[4].mxu0  ;;  %v952_v2 = vpop.f32.mrb[4].mxu1 }
 0x134   :  { %v441_v3 = vadd.f32 %v920_v1, %v1207_v40  ;;  %v569_v4 = vadd.f32 %v952_v2, %v1207_v40  ;;  %v432_v5 = vpop.f32.mrb[5].mxu0  ;;  %v560_v6 = vpop.f32.mrb[5].mxu1 }
 0x135   :  { %v433_v7 = vadd.f32 %v1207_v40, %v432_v5  ;;  %v561_v8 = vadd.f32 %v1207_v40, %v560_v6  ;;  %v921_v9 = vpop.f32.mrb[6].mxu0  ;;  %v953_v10 = vpop.f32.mrb[6].mxu1 }
 0x136   :  { %v677_v11 = vmax.f32 %v441_v3, 0.0  ;;  %v709_v12 = vmax.f32 %v569_v4, 0.0  ;;  %v444_v13 = vadd.f32 %v921_v9, %v1207_v40  ;;  %v572_v14 = vadd.f32 %v953_v10, %v1207_v40  ;;  %v435_v15 = vpop.f32.mrb[7].mxu0  ;;  %v563_v16 = vpop.f32.mrb[7].mxu1 }
 0x137   :  { %v675_v17 = vmax.f32 %v433_v7, 0.0  ;;  %v707_v18 = vmax.f32 %v561_v8, 0.0  ;;  %v436_v19 = vadd.f32 %v1207_v40, %v435_v15  ;;  %v564_v20 = vadd.f32 %v1207_v40, %v563_v16 }
 0x138   :  { %741 = vst [vmem:[#allocation8 + $0x30] sm:$0xff] %v677_v11  ;;  %773 = vst [vmem:[#allocation8 + $0x130] sm:$0xff] %v709_v12  ;;  %v678_v21 = vmax.f32 %v444_v13, 0.0  ;;  %v710_v22 = vmax.f32 %v572_v14, 0.0 }
 0x139   :  { %739 = vst [vmem:[#allocation8 + $0x20] sm:$0xff] %v675_v17  ;;  %771 = vst [vmem:[#allocation8 + $0x120] sm:$0xff] %v707_v18  ;;  %v676_v23 = vmax.f32 %v436_v19, 0.0  ;;  %v708_v24 = vmax.f32 %v564_v20, 0.0 }
 0x13a   :  { %742 = vst [vmem:[#allocation8 + $0x38] sm:$0xff] %v678_v21  ;;  %774 = vst [vmem:[#allocation8 + $0x138] sm:$0xff] %v710_v22 }
 0x13b   :  { %740 = vst [vmem:[#allocation8 + $0x28] sm:$0xff] %v676_v23  ;;  %772 = vst [vmem:[#allocation8 + $0x128] sm:$0xff] %v708_v24  ;;  %v924_v25 = vpop.f32.mrb[8].mxu0  ;;  %v956_v26 = vpop.f32.mrb[8].mxu1 }
 0x13c   :  { %v457_v27 = vadd.f32 %v924_v25, %v1207_v40  ;;  %v585_v28 = vadd.f32 %v956_v26, %v1207_v40  ;;  %v448_v29 = vpop.f32.mrb[9].mxu0  ;;  %v576_v30 = vpop.f32.mrb[9].mxu1 }
 0x13d   :  { %v449_v31 = vadd.f32 %v1207_v40, %v448_v29  ;;  %v577_v32 = vadd.f32 %v1207_v40, %v576_v30  ;;  %v925_v33 = vpop.f32.mrb[10].mxu0  ;;  %v957_v34 = vpop.f32.mrb[10].mxu1 }
 0x13e   :  { %v681_v35 = vmax.f32 %v457_v27, 0.0  ;;  %v713_v36 = vmax.f32 %v585_v28, 0.0  ;;  %v460_v37 = vadd.f32 %v925_v33, %v1207_v40  ;;  %v588_v38 = vadd.f32 %v957_v34, %v1207_v40  ;;  %v451_v39 = vpop.f32.mrb[11].mxu0  ;;  %v579_v41 = vpop.f32.mrb[11].mxu1 }
 0x13f   :  { %v679_v42 = vmax.f32 %v449_v31, 0.0  ;;  %v711_v43 = vmax.f32 %v577_v32, 0.0  ;;  %v452_v44 = vadd.f32 %v1207_v40, %v451_v39  ;;  %v580_v45 = vadd.f32 %v1207_v40, %v579_v41 }
 0x140   :  { %745 = vst [vmem:[#allocation8 + $0x50] sm:$0xff] %v681_v35  ;;  %777 = vst [vmem:[#allocation8 + $0x150] sm:$0xff] %v713_v36  ;;  %v682_v46 = vmax.f32 %v460_v37, 0.0  ;;  %v714_v47 = vmax.f32 %v588_v38, 0.0 }
 0x141   :  { %743 = vst [vmem:[#allocation8 + $0x40] sm:$0xff] %v679_v42  ;;  %775 = vst [vmem:[#allocation8 + $0x140] sm:$0xff] %v711_v43  ;;  %v680_v48 = vmax.f32 %v452_v44, 0.0  ;;  %v712_v49 = vmax.f32 %v580_v45, 0.0 }
 0x142   :  { %746 = vst [vmem:[#allocation8 + $0x58] sm:$0xff] %v682_v46  ;;  %778 = vst [vmem:[#allocation8 + $0x158] sm:$0xff] %v714_v47 }
 0x143   :  { %744 = vst [vmem:[#allocation8 + $0x48] sm:$0xff] %v680_v48  ;;  %776 = vst [vmem:[#allocation8 + $0x148] sm:$0xff] %v712_v49  ;;  %v928_v50 = vpop.f32.mrb[12].mxu0  ;;  %v960_v51 = vpop.f32.mrb[12].mxu1 }
 0x144   :  { %v473_v52 = vadd.f32 %v928_v50, %v1207_v40  ;;  %v601_v53 = vadd.f32 %v960_v51, %v1207_v40  ;;  %v464_v54 = vpop.f32.mrb[13].mxu0  ;;  %v592_v55 = vpop.f32.mrb[13].mxu1 }
 0x145   :  { %v465_v56 = vadd.f32 %v1207_v40, %v464_v54  ;;  %v593_v57 = vadd.f32 %v1207_v40, %v592_v55  ;;  %v929_v58 = vpop.f32.mrb[14].mxu0  ;;  %v961_v59 = vpop.f32.mrb[14].mxu1 }
 0x146   :  { %v685_v60 = vmax.f32 %v473_v52, 0.0  ;;  %v717_v61 = vmax.f32 %v601_v53, 0.0  ;;  %v476_v62 = vadd.f32 %v929_v58, %v1207_v40  ;;  %v604_v63 = vadd.f32 %v961_v59, %v1207_v40  ;;  %v467_v0 = vpop.f32.mrb[15].mxu0  ;;  %v595_v1 = vpop.f32.mrb[15].mxu1 }
 0x147   :  { %v683_v2 = vmax.f32 %v465_v56, 0.0  ;;  %v715_v3 = vmax.f32 %v593_v57, 0.0  ;;  %v468_v4 = vadd.f32 %v1207_v40, %v467_v0  ;;  %v596_v5 = vadd.f32 %v1207_v40, %v595_v1 }
 0x148   :  { %749 = vst [vmem:[#allocation8 + $0x70] sm:$0xff] %v685_v60  ;;  %781 = vst [vmem:[#allocation8 + $0x170] sm:$0xff] %v717_v61  ;;  %v686_v6 = vmax.f32 %v476_v62, 0.0  ;;  %v718_v7 = vmax.f32 %v604_v63, 0.0 }
 0x149   :  { %747 = vst [vmem:[#allocation8 + $0x60] sm:$0xff] %v683_v2  ;;  %779 = vst [vmem:[#allocation8 + $0x160] sm:$0xff] %v715_v3  ;;  %v684_v8 = vmax.f32 %v468_v4, 0.0  ;;  %v716_v9 = vmax.f32 %v596_v5, 0.0 }
 0x14a   :  { %750 = vst [vmem:[#allocation8 + $0x78] sm:$0xff] %v686_v6  ;;  %782 = vst [vmem:[#allocation8 + $0x178] sm:$0xff] %v718_v7 }
 0x14b   :  { %748 = vst [vmem:[#allocation8 + $0x68] sm:$0xff] %v684_v8  ;;  %780 = vst [vmem:[#allocation8 + $0x168] sm:$0xff] %v716_v9  ;;  %v932_v10 = vpop.f32.mrb[16].mxu0  ;;  %v964_v11 = vpop.f32.mrb[16].mxu1 }
 0x14c   :  { %v489_v12 = vadd.f32 %v932_v10, %v1207_v40  ;;  %v617_v13 = vadd.f32 %v964_v11, %v1207_v40  ;;  %v480_v14 = vpop.f32.mrb[17].mxu0  ;;  %v608_v15 = vpop.f32.mrb[17].mxu1 }
 0x14d   :  { %v481_v16 = vadd.f32 %v1207_v40, %v480_v14  ;;  %v609_v17 = vadd.f32 %v1207_v40, %v608_v15  ;;  %v933_v18 = vpop.f32.mrb[18].mxu0  ;;  %v965_v19 = vpop.f32.mrb[18].mxu1 }
 0x14e   :  { %v689_v20 = vmax.f32 %v489_v12, 0.0  ;;  %v721_v21 = vmax.f32 %v617_v13, 0.0  ;;  %v492_v22 = vadd.f32 %v933_v18, %v1207_v40  ;;  %v620_v23 = vadd.f32 %v965_v19, %v1207_v40  ;;  %v483_v24 = vpop.f32.mrb[19].mxu0  ;;  %v611_v25 = vpop.f32.mrb[19].mxu1 }
 0x14f   :  { %v687_v26 = vmax.f32 %v481_v16, 0.0  ;;  %v719_v27 = vmax.f32 %v609_v17, 0.0  ;;  %v484_v28 = vadd.f32 %v1207_v40, %v483_v24  ;;  %v612_v29 = vadd.f32 %v1207_v40, %v611_v25 }
 0x150   :  { %753 = vst [vmem:[#allocation8 + $0x90] sm:$0xff] %v689_v20  ;;  %785 = vst [vmem:[#allocation8 + $0x190] sm:$0xff] %v721_v21  ;;  %v690_v30 = vmax.f32 %v492_v22, 0.0  ;;  %v722_v31 = vmax.f32 %v620_v23, 0.0 }
 0x151   :  { %751 = vst [vmem:[#allocation8 + $0x80] sm:$0xff] %v687_v26  ;;  %783 = vst [vmem:[#allocation8 + $0x180] sm:$0xff] %v719_v27  ;;  %v688_v32 = vmax.f32 %v484_v28, 0.0  ;;  %v720_v33 = vmax.f32 %v612_v29, 0.0 }
 0x152   :  { %754 = vst [vmem:[#allocation8 + $0x98] sm:$0xff] %v690_v30  ;;  %786 = vst [vmem:[#allocation8 + $0x198] sm:$0xff] %v722_v31 }
 0x153   :  { %752 = vst [vmem:[#allocation8 + $0x88] sm:$0xff] %v688_v32  ;;  %784 = vst [vmem:[#allocation8 + $0x188] sm:$0xff] %v720_v33  ;;  %v936_v34 = vpop.f32.mrb[20].mxu0  ;;  %v968_v35 = vpop.f32.mrb[20].mxu1 }
 0x154   :  { %v505_v36 = vadd.f32 %v936_v34, %v1207_v40  ;;  %v633_v37 = vadd.f32 %v968_v35, %v1207_v40  ;;  %v496_v38 = vpop.f32.mrb[21].mxu0  ;;  %v624_v39 = vpop.f32.mrb[21].mxu1 }
 0x155   :  { %v497_v41 = vadd.f32 %v1207_v40, %v496_v38  ;;  %v625_v42 = vadd.f32 %v1207_v40, %v624_v39  ;;  %v937_v43 = vpop.f32.mrb[22].mxu0  ;;  %v969_v44 = vpop.f32.mrb[22].mxu1 }
 0x156   :  { %v693_v45 = vmax.f32 %v505_v36, 0.0  ;;  %v725_v46 = vmax.f32 %v633_v37, 0.0  ;;  %v508_v47 = vadd.f32 %v937_v43, %v1207_v40  ;;  %v636_v48 = vadd.f32 %v969_v44, %v1207_v40  ;;  %v499_v49 = vpop.f32.mrb[23].mxu0  ;;  %v627_v50 = vpop.f32.mrb[23].mxu1 }
 0x157   :  { %v691_v51 = vmax.f32 %v497_v41, 0.0  ;;  %v723_v52 = vmax.f32 %v625_v42, 0.0  ;;  %v500_v53 = vadd.f32 %v1207_v40, %v499_v49  ;;  %v628_v54 = vadd.f32 %v1207_v40, %v627_v50 }
 0x158   :  { %757 = vst [vmem:[#allocation8 + $0xb0] sm:$0xff] %v693_v45  ;;  %789 = vst [vmem:[#allocation8 + $0x1b0] sm:$0xff] %v725_v46  ;;  %v694_v55 = vmax.f32 %v508_v47, 0.0  ;;  %v726_v56 = vmax.f32 %v636_v48, 0.0 }
 0x159   :  { %755 = vst [vmem:[#allocation8 + $0xa0] sm:$0xff] %v691_v51  ;;  %787 = vst [vmem:[#allocation8 + $0x1a0] sm:$0xff] %v723_v52  ;;  %v692_v57 = vmax.f32 %v500_v53, 0.0  ;;  %v724_v58 = vmax.f32 %v628_v54, 0.0 }
 0x15a   :  { %758 = vst [vmem:[#allocation8 + $0xb8] sm:$0xff] %v694_v55  ;;  %790 = vst [vmem:[#allocation8 + $0x1b8] sm:$0xff] %v726_v56 }
 0x15b   :  { %756 = vst [vmem:[#allocation8 + $0xa8] sm:$0xff] %v692_v57  ;;  %788 = vst [vmem:[#allocation8 + $0x1a8] sm:$0xff] %v724_v58  ;;  %v940_v59 = vpop.f32.mrb[24].mxu0  ;;  %v972_v60 = vpop.f32.mrb[24].mxu1 }
 0x15c   :  { %v521_v61 = vadd.f32 %v940_v59, %v1207_v40  ;;  %v649_v62 = vadd.f32 %v972_v60, %v1207_v40  ;;  %v512_v63 = vpop.f32.mrb[25].mxu0  ;;  %v640_v0 = vpop.f32.mrb[25].mxu1 }
 0x15d   :  { %v513_v1 = vadd.f32 %v1207_v40, %v512_v63  ;;  %v641_v2 = vadd.f32 %v1207_v40, %v640_v0  ;;  %v941_v3 = vpop.f32.mrb[26].mxu0  ;;  %v973_v4 = vpop.f32.mrb[26].mxu1 }
 0x15e   :  { %v697_v5 = vmax.f32 %v521_v61, 0.0  ;;  %v729_v6 = vmax.f32 %v649_v62, 0.0  ;;  %v524_v7 = vadd.f32 %v941_v3, %v1207_v40  ;;  %v652_v8 = vadd.f32 %v973_v4, %v1207_v40  ;;  %v515_v9 = vpop.f32.mrb[27].mxu0  ;;  %v643_v10 = vpop.f32.mrb[27].mxu1 }
 0x15f   :  { %v695_v11 = vmax.f32 %v513_v1, 0.0  ;;  %v727_v12 = vmax.f32 %v641_v2, 0.0  ;;  %v516_v13 = vadd.f32 %v1207_v40, %v515_v9  ;;  %v644_v14 = vadd.f32 %v1207_v40, %v643_v10 }
 0x160   :  { %761 = vst [vmem:[#allocation8 + $0xd0] sm:$0xff] %v697_v5  ;;  %793 = vst [vmem:[#allocation8 + $0x1d0] sm:$0xff] %v729_v6  ;;  %v698_v15 = vmax.f32 %v524_v7, 0.0  ;;  %v730_v16 = vmax.f32 %v652_v8, 0.0 }
 0x161   :  { %759 = vst [vmem:[#allocation8 + $0xc0] sm:$0xff] %v695_v11  ;;  %791 = vst [vmem:[#allocation8 + $0x1c0] sm:$0xff] %v727_v12  ;;  %v696_v17 = vmax.f32 %v516_v13, 0.0  ;;  %v728_v18 = vmax.f32 %v644_v14, 0.0 }
 0x162   :  { %762 = vst [vmem:[#allocation8 + $0xd8] sm:$0xff] %v698_v15  ;;  %794 = vst [vmem:[#allocation8 + $0x1d8] sm:$0xff] %v730_v16 }
 0x163   :  { %760 = vst [vmem:[#allocation8 + $0xc8] sm:$0xff] %v696_v17  ;;  %792 = vst [vmem:[#allocation8 + $0x1c8] sm:$0xff] %v728_v18  ;;  %v944_v19 = vpop.f32.mrb[28].mxu0  ;;  %v976_v20 = vpop.f32.mrb[28].mxu1 }
 0x164   :  { %v537_v21 = vadd.f32 %v944_v19, %v1207_v40  ;;  %v665_v22 = vadd.f32 %v976_v20, %v1207_v40  ;;  %v528_v23 = vpop.f32.mrb[29].mxu0  ;;  %v656_v24 = vpop.f32.mrb[29].mxu1 }
 0x165   :  { %v529_v25 = vadd.f32 %v1207_v40, %v528_v23  ;;  %v657_v26 = vadd.f32 %v1207_v40, %v656_v24  ;;  %v945_v27 = vpop.f32.mrb[30].mxu0  ;;  %v977_v28 = vpop.f32.mrb[30].mxu1 }
 0x166   :  { %v701_v29 = vmax.f32 %v537_v21, 0.0  ;;  %v733_v30 = vmax.f32 %v665_v22, 0.0  ;;  %v540_v31 = vadd.f32 %v945_v27, %v1207_v40  ;;  %v668_v32 = vadd.f32 %v977_v28, %v1207_v40  ;;  %v531_v33 = vpop.f32.mrb[31].mxu0  ;;  %v659_v34 = vpop.f32.mrb[31].mxu1 }
 0x167   :  { %v699_v35 = vmax.f32 %v529_v25, 0.0  ;;  %v731_v36 = vmax.f32 %v657_v26, 0.0  ;;  %v532_v37 = vadd.f32 %v1207_v40, %v531_v33  ;;  %v660_v38 = vadd.f32 %v1207_v40, %v659_v34 }
 0x168   :  { %765 = vst [vmem:[#allocation8 + $0xf0] sm:$0xff] %v701_v29  ;;  %797 = vst [vmem:[#allocation8 + $0x1f0] sm:$0xff] %v733_v30  ;;  %v702_v39 = vmax.f32 %v540_v31, 0.0  ;;  %v734_v41 = vmax.f32 %v668_v32, 0.0 }
 0x169   :  { %763 = vst [vmem:[#allocation8 + $0xe0] sm:$0xff] %v699_v35  ;;  %795 = vst [vmem:[#allocation8 + $0x1e0] sm:$0xff] %v731_v36  ;;  %v700_v42 = vmax.f32 %v532_v37, 0.0  ;;  %v732_v43 = vmax.f32 %v660_v38, 0.0 }
 0x16a   :  { %766 = vst [vmem:[#allocation8 + $0xf8] sm:$0xff] %v702_v39  ;;  %798 = vst [vmem:[#allocation8 + $0x1f8] sm:$0xff] %v734_v41 }
 0x16b   :  { %764 = vst [vmem:[#allocation8 + $0xe8] sm:$0xff] %v700_v42  ;;  %796 = vst [vmem:[#allocation8 + $0x1e8] sm:$0xff] %v732_v43 }
 0x16c   :  { %1119 = shalt.err (!%p1116_p0)
}
 0x16d   :  { %s1120_s26 = scalar_lea.hbm %s1288_s3, 8192 }
 0x16e   :  { %p1121_p1 = scmp.ne.s32.totalorder %s1288_s3, %s1120_s26  ;;  %p1124_p2 = scmp.lt.u32.totalorder %s1120_s26, %s1288_s3 }
 0x170   :  { %p1126_p3 = pnand %p1124_p2, %p1121_p1 }
 0x172   :  { %1129 = shalt.err (!%p1126_p3)
}
 0x173   :  { %s1142_s4 = smov 128   ;;  %s1143_s5 = smov 8  }
 0x174   :  { %810 = dma.vmem_to_hbm [thread:$0]  %s805_s22, 8192, %s1288_s3, [#allocation4], %s1142_s4, %s1142_s4, %s1143_s5  }
 0x175   :  { %1134 = dma.done.wait [#allocation4], 8192  }
 0x176   :  { %1135 = vsyncadd [#allocation4], 4294959104 }
 0x177   :  { %814 = vsyncpa [#allocation3], 1 }
 0x178   :  { %815 = vsyncpa [#allocation6], 1 }
 0x179   :  { %816 = vsyncpa [#allocation4], 1 }

</bundles_post_ra>
